<compile_context>
chip_gen: v6e
topology: v6e:2x2x1
jax: 0.10.0
libtpu: 0.0.40
codegen_flags: <defaults>
</compile_context>

<pallas_src>
import functools

import jax
import jax.numpy as jnp
from jax.experimental import pallas as pl
from jax.experimental.pallas import tpu as pltpu

_LANE = 128
_SUBLANE = 8


def _round_up(x, m):
    return ((x + m - 1) // m) * m


def _block_vmem_bytes(block_shape, elem_bytes):
    """Padded VMEM bytes of ONE buffer holding `block_shape`:
    last dim -> 128 lanes, second-to-last -> 8 sublanes."""
    s = list(block_shape)
    if len(s) == 1:
        s = [1] + s
    s[-1] = _round_up(int(s[-1]), _LANE)
    s[-2] = _round_up(int(s[-2]), _SUBLANE)
    n = 1
    for d in s:
        n *= int(d)
    return n * elem_bytes


def _sublane_align(elem_bytes):
    # 8 sublanes for 4-byte outputs, 16 for 2-byte (packed), 32 for 1-byte.
    return max(_SUBLANE, 32 // max(1, elem_bytes))


# --------------------------------------------------------------------------
# Kernels
# --------------------------------------------------------------------------
def _neuralsort_small_kernel(s_ref, out_ref, *, inv_tau, n):
    """Lane-dense small-n kernel (n <= 64).

    s_ref   : (Bt, n)     scores; batch on sublanes, j on lanes.
    out_ref : (Bt, n*n)   row-major flattened P_hat (lane-dense writeback).
    """
    s = s_ref[...].astype(jnp.float32)                         # (Bt, n)
    lane = jax.lax.broadcasted_iota(jnp.int32, s.shape, 1)     # lane index j

    # B_j = sum_k |s_j - s_k|, built with one-hot lane extraction (only
    # iota / where / lane-reduce / broadcast ops -- no gathers, no transposes).
    # n is small, so the loop is fully unrolled.
    b_div_tau = jnp.zeros_like(s)
    for k in range(n):
        s_k = jnp.sum(jnp.where(lane == k, s, 0.0), axis=-1, keepdims=True)
        b_div_tau = b_div_tau + jnp.abs(s - s_k)
    b_div_tau = b_div_tau * inv_tau                            # fold 1/tau once

    # One softmax row per permutation-row i, stored straight into the flat
    # lane-dense output block at lane offset i*n (row-major => free reshape).
    for i in range(n):
        scale_i = float((n - 1) - 2 * i) * inv_tau             # python constant
        z = s * scale_i - b_div_tau                            # == P_max[i,:]/tau
        z = z - jnp.max(z, axis=-1, keepdims=True)             # stable softmax
        e = jnp.exp(z)
        p = e / jnp.sum(e, axis=-1, keepdims=True)             # exact divide
        out_ref[:, i * n:(i + 1) * n] = p.astype(out_ref.dtype)


def _neuralsort_tiled_kernel(s_row_ref, s_col_ref, out_ref, b_scratch,
                             *, inv_tau, n, kc):
    """General row-tiled kernel (large n).

    s_row_ref : (Bt, 1, n)   scores along lanes    (s_j)
    s_col_ref : (Bt, n, 1)   scores along sublanes (s_k), wrapper-side reshape
    out_ref   : (Bt, TM, n)  P_hat row tile (rows i in [ri*TM, ri*TM + TM))
    b_scratch : (Bt, 1, n)   B_j / tau, computed once per batch tile
    """
    _, tm, _ = out_ref.shape

    # B_j/tau: computed once per batch tile at row-tile 0.  Valid for later
    # row tiles only because the row-tile axis is sequential ("arbitrary").
    @pl.when(pl.program_id(1) == 0)
    def _():
        s_row = s_row_ref[...]                                 # (Bt, 1, n)
        acc = jnp.zeros(s_row.shape, jnp.float32)
        nfull = n // kc
        rem = n - nfull * kc

        def chunk(start):
            s_col_chunk = s_col_ref[:, pl.ds(start, kc), :]    # (Bt, kc, 1)
            # |s_k - s_j| summed over k (symmetry: column sums == row sums),
            # lands directly as a lane-major row -> no transpose needed.
            return jnp.sum(jnp.abs(s_col_chunk - s_row), axis=1, keepdims=True)

        if nfull > 0:
            if nfull <= 8:
                for c in range(nfull):                         # short: static unroll
                    acc = acc + chunk(c * kc)
            else:
                def body(c, a):                                # long: fori bounds live ranges
                    start = pl.multiple_of(c * kc, kc)
                    return a + chunk(start)
                acc = jax.lax.fori_loop(0, nfull, body, acc, unroll=4)
        if rem > 0:
            tail = s_col_ref[:, nfull * kc:n, :]               # (Bt, rem, 1)
            acc = acc + jnp.sum(jnp.abs(tail - s_row), axis=1, keepdims=True)
        b_scratch[...] = acc * inv_tau                         # fold 1/tau once

    # P_max/tau and softmax for this row tile.
    s_row = s_row_ref[...]                                     # (Bt, 1, n)
    i0 = (pl.program_id(1) * tm).astype(jnp.float32)
    row_ids = jax.lax.broadcasted_iota(jnp.int32, (1, tm, 1), 1).astype(jnp.float32)
    # scaling_i / tau with scaling_i = (n - 1) - 2*i
    scale_col = (float(n - 1) - 2.0 * (i0 + row_ids)) * inv_tau    # (1, TM, 1)

    z = scale_col * s_row - b_scratch[...]                     # (Bt, TM, n), already /tau
    z = z - jnp.max(z, axis=-1, keepdims=True)                 # stable softmax
    e = jnp.exp(z)
    out_ref[...] = (e / jnp.sum(e, axis=-1, keepdims=True)).astype(out_ref.dtype)


# --------------------------------------------------------------------------
# Tile choosers (padded-footprint aware, v7x-safe budget)
# --------------------------------------------------------------------------
def _choose_bt_small(b, n, out_elem_bytes, budget):
    """Batch tile for the lane-dense path. The block's sublane dim must be a
    multiple of the sublane alignment or equal to b."""
    nn = n * n
    sub = _sublane_align(out_elem_bytes)

    def ws(bt):
        return (2 * _block_vmem_bytes((bt, nn), out_elem_bytes)   # out, dbl-buffered
                + 2 * _block_vmem_bytes((bt, n), 4)               # scores, dbl-buffered
                + 6 * _block_vmem_bytes((bt, n), 4))              # live f32 temporaries

    bt = max(1, budget // max(1, ws(sub))) * sub   # largest aligned tile in budget
    # v7x megacore: keep >= 2 steps on the parallel batch axis when the
    # alignment rule allows it; for tiny b a single step is unavoidable & cheap.
    if b >= 2 * sub:
        bt = min(bt, max(sub, ((b // 2) // sub) * sub))
    if bt >= b:
        return int(b)
    return int(max(sub, (bt // sub) * sub))


def _choose_tiles_general(b, n, out_elem_bytes, budget):
    """(batch_tile, row_tile) for the general path, from PADDED footprints."""
    g = _sublane_align(out_elem_bytes)
    n_lanes = _round_up(n, _LANE)
    target_out = 2 << 20                         # ~2 MiB out block ~= HBM roofline
    tm = target_out // (n_lanes * out_elem_bytes)
    tm = n if tm >= n else max(g, (tm // g) * g)

    fixed = 1 << 20                              # B-chunk temp / slack

    def ws(bt):
        return (2 * _block_vmem_bytes((bt, tm, n), out_elem_bytes)   # out
                + 2 * _block_vmem_bytes((bt, tm, n), 4)              # z / e live values
                + 2 * _block_vmem_bytes((bt, 1, n), 4)               # s_row
                + 2 * _block_vmem_bytes((bt, n, 1), 4)               # s_col (lane-padded!)
                + 1 * _block_vmem_bytes((bt, 1, n), 4)               # B_j scratch
                + fixed)

    per_bt = max(1, ws(1) - fixed)
    bt = max(1, (budget - fixed) // per_bt)
    if b >= 2:
        bt = min(bt, max(1, b // 2))             # v7x megacore: >= 2 batch steps
    return int(min(bt, b)), int(tm)


def _choose_kc(bt, n, chunk_budget=512 * 1024):
    """Chunk length over k for the B_j accumulation: bounds the (Bt, kc, n)
    broadcast-abs temporary to ~chunk_budget bytes (padded lanes)."""
    n_lanes = _round_up(n, _LANE)
    kc = chunk_budget // (max(1, bt) * n_lanes * 4)
    kc = max(_SUBLANE, (kc // _SUBLANE) * _SUBLANE)
    return int(min(n, kc))


# --------------------------------------------------------------------------
# Wrapper
# --------------------------------------------------------------------------
def neural_sort(scores, tau=1.0, hard=False, out_dtype=jnp.float32,
                block_b=None, block_rows=None, b_chunk=None, lane_dense=None,
                vmem_budget_bytes=20 * 1024 * 1024):
    """scores: (batch, n) float array -> P_hat: (batch, n, n).

    out_dtype=jnp.bfloat16 halves writeback bytes on this HBM-write-bound
    kernel (big win on v5e/v6e, smaller on v7x); internal math is always f32.
    Default stays f32 to match the PyTorch module exactly.
    """
    b, n = scores.shape
    scores = scores.astype(jnp.float32)
    inv_tau = 1.0 / float(tau)
    elem = jnp.dtype(out_dtype).itemsize

    use_lane_dense = (n <= 64) if lane_dense is None else bool(lane_dense)

    if use_lane_dense:
        # ---- small-n path: flat (b, n*n) lane-dense output ----
        sub = _sublane_align(elem)
        if block_b is not None:
            bt = int(min(b, max(1, block_b)))
        else:
            bt = _choose_bt_small(b, n, elem, vmem_budget_bytes)
        if bt != b and bt % sub != 0:            # enforce (8,128)-rule on sublane dim
            bt = min(b, max(sub, (bt // sub) * sub))
            if bt != b and bt % sub != 0:
                bt = b

        ws = (2 * _block_vmem_bytes((bt, n * n), elem)
              + 8 * _block_vmem_bytes((bt, n), 4))
        vlimit = int(min(48 << 20, max(32 << 20, ws + (8 << 20))))

        kernel = functools.partial(_neuralsort_small_kernel, inv_tau=inv_tau, n=n)
        flat = pl.pallas_call(
            kernel,
            out_shape=jax.ShapeDtypeStruct((b, n * n), out_dtype),
            grid_spec=pltpu.PrefetchScalarGridSpec(
                num_scalar_prefetch=0,
                grid=(pl.cdiv(b, bt),),
                in_specs=[pl.BlockSpec((bt, n), lambda bi: (bi, 0))],
                out_specs=pl.BlockSpec((bt, n * n), lambda bi: (bi, 0)),
            ),
            compiler_params=pltpu.CompilerParams(
                dimension_semantics=("parallel",),
                vmem_limit_bytes=vlimit,
            ),
        )(scores)
        p_hat = flat.reshape(b, n, n)            # free row-major reshape
    else:
        # ---- general path: (b, n, n) output, row-tiled over i ----
        bt, tm = _choose_tiles_general(b, n, elem, vmem_budget_bytes)
        if block_b is not None:
            bt = int(min(b, max(1, block_b)))
        if block_rows is not None:
            tm = int(min(n, max(1, block_rows)))
            g = _sublane_align(elem)
            if tm != n and tm % g != 0:
                tm = max(g, (tm // g) * g)
        kc = _choose_kc(bt, n) if b_chunk is None else int(min(n, max(1, b_chunk)))

        s_row = scores.reshape(b, 1, n)          # free layout plumbing; no
        s_col = scores.reshape(b, n, 1)          # in-kernel transposes needed

        ws = (2 * _block_vmem_bytes((bt, tm, n), elem)
              + 2 * _block_vmem_bytes((bt, tm, n), 4)
              + 2 * _block_vmem_bytes((bt, 1, n), 4)
              + 2 * _block_vmem_bytes((bt, n, 1), 4)
              + _block_vmem_bytes((bt, 1, n), 4)
              + (1 << 20))
        vlimit = int(min(48 << 20, max(32 << 20, ws + (8 << 20))))

        kernel = functools.partial(_neuralsort_tiled_kernel,
                                   inv_tau=inv_tau, n=n, kc=kc)
        p_hat = pl.pallas_call(
            kernel,
            out_shape=jax.ShapeDtypeStruct((b, n, n), out_dtype),
            grid_spec=pltpu.PrefetchScalarGridSpec(
                num_scalar_prefetch=0,
                grid=(pl.cdiv(b, bt), pl.cdiv(n, tm)),
                in_specs=[
                    pl.BlockSpec((bt, 1, n), lambda bi, ri: (bi, 0, 0)),
                    pl.BlockSpec((bt, n, 1), lambda bi, ri: (bi, 0, 0)),
                ],
                out_specs=pl.BlockSpec((bt, tm, n), lambda bi, ri: (bi, ri, 0)),
                scratch_shapes=[pltpu.VMEM((bt, 1, n), jnp.float32)],
            ),
            compiler_params=pltpu.CompilerParams(
                # Row-tile axis MUST stay sequential ("arbitrary"): the B_j
                # scratch is written at row-tile 0 and reused by later tiles.
                dimension_semantics=("parallel", "arbitrary"),
                vmem_limit_bytes=vlimit,
            ),
        )(s_row, s_col)

    if hard:
        # Straight-through hard permutation (forward value = one-hot rows).
        # TODO(synk): fuse the argmax/one-hot epilogue into the kernel to avoid
        # this extra n^2 HBM round-trip in hard mode.
        idx = jnp.argmax(p_hat, axis=-1)
        p = jax.nn.one_hot(idx, n, dtype=p_hat.dtype)
        p_hat = jax.lax.stop_gradient(p - p_hat) + p_hat
    return p_hat


# --------------------------------------------------------------------------
# Pure-JAX reference (mirrors the PyTorch module, hard=False)
# --------------------------------------------------------------------------
def _neural_sort_ref(scores, tau=1.0):
    scores = scores.astype(jnp.float32)[..., None]              # (b, n, 1)
    _, n, _ = scores.shape
    a = jnp.abs(scores - jnp.transpose(scores, (0, 2, 1)))      # (b, n, n)
    b_mat = jnp.sum(a, axis=-1, keepdims=True) * jnp.ones((1, 1, n), jnp.float32)
    scaling = (n + 1 - 2.0 * (jnp.arange(n, dtype=jnp.float32) + 1.0))[None, :]
    c = scores @ scaling[None]                                  # (b, n, n)
    p_max = jnp.transpose(c - b_mat, (0, 2, 1))
    return jax.nn.softmax(p_max / tau, axis=-1)


if __name__ == "__main__":
    key = jax.random.PRNGKey(0)

    # Case 1: canonical small case (lane-dense flat-output kernel path).
    b1, n1 = 4, 8
    scores1 = jax.random.normal(key, (b1, n1), dtype=jnp.float32)
    out1 = jax.block_until_ready(neural_sort(scores1, tau=1.0))
    ref1 = _neural_sort_ref(scores1, tau=1.0)
    assert out1.shape == (b1, n1, n1)
    assert jnp.allclose(out1, ref1, atol=1e-3, rtol=1e-3), "case1 mismatch vs reference"
    # Exact divide now -> rows are stochastic to f32 precision.
    assert jnp.allclose(jnp.sum(out1, axis=-1), 1.0, atol=1e-4), "case1 rows not stochastic"

    # Case 2: lane-dense path with several batch tiles + a partial final tile.
    b2, n2 = 20, 24
    scores2 = jax.random.normal(jax.random.PRNGKey(1), (b2, n2), dtype=jnp.float32)
    out2 = jax.block_until_ready(neural_sort(scores2, tau=0.5))
    ref2 = _neural_sort_ref(scores2, tau=0.5)
    assert jnp.allclose(out2, ref2, atol=1e-3, rtol=1e-3), "case2 mismatch vs reference"
    assert jnp.allclose(jnp.sum(out2, axis=-1), 1.0, atol=1e-4), "case2 rows not stochastic"

    # Case 3: general tiled path (row tiling, partial row tile, B_j scratch
    # reuse across row tiles, chunked B loop with fori + remainder).
    b3, n3 = 3, 200
    scores3 = jax.random.normal(jax.random.PRNGKey(2), (b3, n3), dtype=jnp.float32)
    out3 = jax.block_until_ready(
        neural_sort(scores3, tau=1.0, lane_dense=False,
                    block_b=1, block_rows=64, b_chunk=16))
    ref3 = _neural_sort_ref(scores3, tau=1.0)
    assert jnp.allclose(out3, ref3, atol=1e-3, rtol=1e-3), "case3 mismatch vs reference"
    assert jnp.allclose(jnp.sum(out3, axis=-1), 1.0, atol=1e-4), "case3 rows not stochastic"

    # Case 4: hard (straight-through) mode on top of the kernel output.
    hard1 = jax.block_until_ready(neural_sort(scores1, tau=1.0, hard=True))
    assert hard1.shape == (b1, n1, n1)
    assert jnp.allclose(jnp.sum(hard1, axis=-1), 1.0, atol=1e-5), "hard rows not one-hot"

    print("KERNEL_OK")
</pallas_src>

<mosaic_0001>
module attributes {stable_mosaic.version = 11 : i64} {
  func.func @_neuralsort_small_kernel(%arg0: i32, %arg1: memref<4x8xf32, #tpu.memory_space<vmem>>, %arg2: memref<4x64xf32, #tpu.memory_space<vmem>>) attributes {dimension_semantics = [#tpu.dimension_semantics<parallel>], iteration_bounds = array<i64: 1>, scalar_prefetch = 0 : i64, scratch_operands = 0 : i64, tpu.core_type = #tpu.core_type<tc>, window_params = [{transform_indices = @transform_0, window_bounds = array<i64: 4, 8>}, {transform_indices = @transform_1, window_bounds = array<i64: 4, 64>}]} {
    %c0 = arith.constant 0 : index
    %c0_0 = arith.constant 0 : index
    %0 = vector.load %arg1[%c0, %c0_0] : memref<4x8xf32, #tpu.memory_space<vmem>>, vector<4x8xf32>
    %1 = tpu.iota {dimensions = array<i32: 1>} : vector<4x8xi32>
    %cst = arith.constant 0.000000e+00 : f32
    %2 = vector.broadcast %cst : f32 to vector<4x8xf32>
    %c0_i32 = arith.constant 0 : i32
    %3 = vector.broadcast %c0_i32 : i32 to vector<4x8xi32>
    %4 = arith.cmpi eq, %1, %3 : vector<4x8xi32>
    %cst_1 = arith.constant 0.000000e+00 : f32
    %5 = vector.broadcast %cst_1 : f32 to vector<4x8xf32>
    %6 = arith.select %4, %0, %5 : vector<4x8xi1>, vector<4x8xf32>
    %cst_2 = arith.constant dense<0.000000e+00> : vector<4xf32>
    %7 = vector.multi_reduction <add>, %6, %cst_2 [1] : vector<4x8xf32> to vector<4xf32>
    %8 = vector.shape_cast %7 : vector<4xf32> to vector<4x1xf32>
    %9 = vector.broadcast %8 : vector<4x1xf32> to vector<4x8xf32>
    %10 = arith.subf %0, %9 : vector<4x8xf32>
    %11 = math.absf %10 : vector<4x8xf32>
    %12 = arith.addf %2, %11 : vector<4x8xf32>
    %c1_i32 = arith.constant 1 : i32
    %13 = vector.broadcast %c1_i32 : i32 to vector<4x8xi32>
    %14 = arith.cmpi eq, %1, %13 : vector<4x8xi32>
    %cst_3 = arith.constant 0.000000e+00 : f32
    %15 = vector.broadcast %cst_3 : f32 to vector<4x8xf32>
    %16 = arith.select %14, %0, %15 : vector<4x8xi1>, vector<4x8xf32>
    %cst_4 = arith.constant dense<0.000000e+00> : vector<4xf32>
    %17 = vector.multi_reduction <add>, %16, %cst_4 [1] : vector<4x8xf32> to vector<4xf32>
    %18 = vector.shape_cast %17 : vector<4xf32> to vector<4x1xf32>
    %19 = vector.broadcast %18 : vector<4x1xf32> to vector<4x8xf32>
    %20 = arith.subf %0, %19 : vector<4x8xf32>
    %21 = math.absf %20 : vector<4x8xf32>
    %22 = arith.addf %12, %21 : vector<4x8xf32>
    %c2_i32 = arith.constant 2 : i32
    %23 = vector.broadcast %c2_i32 : i32 to vector<4x8xi32>
    %24 = arith.cmpi eq, %1, %23 : vector<4x8xi32>
    %cst_5 = arith.constant 0.000000e+00 : f32
    %25 = vector.broadcast %cst_5 : f32 to vector<4x8xf32>
    %26 = arith.select %24, %0, %25 : vector<4x8xi1>, vector<4x8xf32>
    %cst_6 = arith.constant dense<0.000000e+00> : vector<4xf32>
    %27 = vector.multi_reduction <add>, %26, %cst_6 [1] : vector<4x8xf32> to vector<4xf32>
    %28 = vector.shape_cast %27 : vector<4xf32> to vector<4x1xf32>
    %29 = vector.broadcast %28 : vector<4x1xf32> to vector<4x8xf32>
    %30 = arith.subf %0, %29 : vector<4x8xf32>
    %31 = math.absf %30 : vector<4x8xf32>
    %32 = arith.addf %22, %31 : vector<4x8xf32>
    %c3_i32 = arith.constant 3 : i32
    %33 = vector.broadcast %c3_i32 : i32 to vector<4x8xi32>
    %34 = arith.cmpi eq, %1, %33 : vector<4x8xi32>
    %cst_7 = arith.constant 0.000000e+00 : f32
    %35 = vector.broadcast %cst_7 : f32 to vector<4x8xf32>
    %36 = arith.select %34, %0, %35 : vector<4x8xi1>, vector<4x8xf32>
    %cst_8 = arith.constant dense<0.000000e+00> : vector<4xf32>
    %37 = vector.multi_reduction <add>, %36, %cst_8 [1] : vector<4x8xf32> to vector<4xf32>
    %38 = vector.shape_cast %37 : vector<4xf32> to vector<4x1xf32>
    %39 = vector.broadcast %38 : vector<4x1xf32> to vector<4x8xf32>
    %40 = arith.subf %0, %39 : vector<4x8xf32>
    %41 = math.absf %40 : vector<4x8xf32>
    %42 = arith.addf %32, %41 : vector<4x8xf32>
    %c4_i32 = arith.constant 4 : i32
    %43 = vector.broadcast %c4_i32 : i32 to vector<4x8xi32>
    %44 = arith.cmpi eq, %1, %43 : vector<4x8xi32>
    %cst_9 = arith.constant 0.000000e+00 : f32
    %45 = vector.broadcast %cst_9 : f32 to vector<4x8xf32>
    %46 = arith.select %44, %0, %45 : vector<4x8xi1>, vector<4x8xf32>
    %cst_10 = arith.constant dense<0.000000e+00> : vector<4xf32>
    %47 = vector.multi_reduction <add>, %46, %cst_10 [1] : vector<4x8xf32> to vector<4xf32>
    %48 = vector.shape_cast %47 : vector<4xf32> to vector<4x1xf32>
    %49 = vector.broadcast %48 : vector<4x1xf32> to vector<4x8xf32>
    %50 = arith.subf %0, %49 : vector<4x8xf32>
    %51 = math.absf %50 : vector<4x8xf32>
    %52 = arith.addf %42, %51 : vector<4x8xf32>
    %c5_i32 = arith.constant 5 : i32
    %53 = vector.broadcast %c5_i32 : i32 to vector<4x8xi32>
    %54 = arith.cmpi eq, %1, %53 : vector<4x8xi32>
    %cst_11 = arith.constant 0.000000e+00 : f32
    %55 = vector.broadcast %cst_11 : f32 to vector<4x8xf32>
    %56 = arith.select %54, %0, %55 : vector<4x8xi1>, vector<4x8xf32>
    %cst_12 = arith.constant dense<0.000000e+00> : vector<4xf32>
    %57 = vector.multi_reduction <add>, %56, %cst_12 [1] : vector<4x8xf32> to vector<4xf32>
    %58 = vector.shape_cast %57 : vector<4xf32> to vector<4x1xf32>
    %59 = vector.broadcast %58 : vector<4x1xf32> to vector<4x8xf32>
    %60 = arith.subf %0, %59 : vector<4x8xf32>
    %61 = math.absf %60 : vector<4x8xf32>
    %62 = arith.addf %52, %61 : vector<4x8xf32>
    %c6_i32 = arith.constant 6 : i32
    %63 = vector.broadcast %c6_i32 : i32 to vector<4x8xi32>
    %64 = arith.cmpi eq, %1, %63 : vector<4x8xi32>
    %cst_13 = arith.constant 0.000000e+00 : f32
    %65 = vector.broadcast %cst_13 : f32 to vector<4x8xf32>
    %66 = arith.select %64, %0, %65 : vector<4x8xi1>, vector<4x8xf32>
    %cst_14 = arith.constant dense<0.000000e+00> : vector<4xf32>
    %67 = vector.multi_reduction <add>, %66, %cst_14 [1] : vector<4x8xf32> to vector<4xf32>
    %68 = vector.shape_cast %67 : vector<4xf32> to vector<4x1xf32>
    %69 = vector.broadcast %68 : vector<4x1xf32> to vector<4x8xf32>
    %70 = arith.subf %0, %69 : vector<4x8xf32>
    %71 = math.absf %70 : vector<4x8xf32>
    %72 = arith.addf %62, %71 : vector<4x8xf32>
    %c7_i32 = arith.constant 7 : i32
    %73 = vector.broadcast %c7_i32 : i32 to vector<4x8xi32>
    %74 = arith.cmpi eq, %1, %73 : vector<4x8xi32>
    %cst_15 = arith.constant 0.000000e+00 : f32
    %75 = vector.broadcast %cst_15 : f32 to vector<4x8xf32>
    %76 = arith.select %74, %0, %75 : vector<4x8xi1>, vector<4x8xf32>
    %cst_16 = arith.constant dense<0.000000e+00> : vector<4xf32>
    %77 = vector.multi_reduction <add>, %76, %cst_16 [1] : vector<4x8xf32> to vector<4xf32>
    %78 = vector.shape_cast %77 : vector<4xf32> to vector<4x1xf32>
    %79 = vector.broadcast %78 : vector<4x1xf32> to vector<4x8xf32>
    %80 = arith.subf %0, %79 : vector<4x8xf32>
    %81 = math.absf %80 : vector<4x8xf32>
    %82 = arith.addf %72, %81 : vector<4x8xf32>
    %cst_17 = arith.constant 1.000000e+00 : f32
    %83 = vector.broadcast %cst_17 : f32 to vector<4x8xf32>
    %84 = arith.mulf %82, %83 : vector<4x8xf32>
    %cst_18 = arith.constant 7.000000e+00 : f32
    %85 = vector.broadcast %cst_18 : f32 to vector<4x8xf32>
    %86 = arith.mulf %0, %85 : vector<4x8xf32>
    %87 = arith.subf %86, %84 : vector<4x8xf32>
    %cst_19 = arith.constant dense<0xFF800000> : vector<4xf32>
    %88 = vector.multi_reduction <maximumf>, %87, %cst_19 [1] : vector<4x8xf32> to vector<4xf32>
    %89 = vector.shape_cast %88 : vector<4xf32> to vector<4x1xf32>
    %90 = vector.broadcast %89 : vector<4x1xf32> to vector<4x8xf32>
    %91 = arith.subf %87, %90 : vector<4x8xf32>
    %92 = math.exp %91 : vector<4x8xf32>
    %cst_20 = arith.constant dense<0.000000e+00> : vector<4xf32>
    %93 = vector.multi_reduction <add>, %92, %cst_20 [1] : vector<4x8xf32> to vector<4xf32>
    %94 = vector.shape_cast %93 : vector<4xf32> to vector<4x1xf32>
    %95 = vector.broadcast %94 : vector<4x1xf32> to vector<4x8xf32>
    %96 = arith.divf %92, %95 : vector<4x8xf32>
    %c0_21 = arith.constant 0 : index
    %c0_22 = arith.constant 0 : index
    %97 = vector.load %arg2[%c0_21, %c0_22] : memref<4x64xf32, #tpu.memory_space<vmem>>, vector<4x8xf32>
    tpu.vector_store %arg2[%c0_21, %c0_22], %96 {strides = array<i32>} : memref<4x64xf32, #tpu.memory_space<vmem>>, vector<4x8xf32>,
    %cst_23 = arith.constant 5.000000e+00 : f32
    %98 = vector.broadcast %cst_23 : f32 to vector<4x8xf32>
    %99 = arith.mulf %0, %98 : vector<4x8xf32>
    %100 = arith.subf %99, %84 : vector<4x8xf32>
    %cst_24 = arith.constant dense<0xFF800000> : vector<4xf32>
    %101 = vector.multi_reduction <maximumf>, %100, %cst_24 [1] : vector<4x8xf32> to vector<4xf32>
    %102 = vector.shape_cast %101 : vector<4xf32> to vector<4x1xf32>
    %103 = vector.broadcast %102 : vector<4x1xf32> to vector<4x8xf32>
    %104 = arith.subf %100, %103 : vector<4x8xf32>
    %105 = math.exp %104 : vector<4x8xf32>
    %cst_25 = arith.constant dense<0.000000e+00> : vector<4xf32>
    %106 = vector.multi_reduction <add>, %105, %cst_25 [1] : vector<4x8xf32> to vector<4xf32>
    %107 = vector.shape_cast %106 : vector<4xf32> to vector<4x1xf32>
    %108 = vector.broadcast %107 : vector<4x1xf32> to vector<4x8xf32>
    %109 = arith.divf %105, %108 : vector<4x8xf32>
    %c0_26 = arith.constant 0 : index
    %c8 = arith.constant 8 : index
    %110 = vector.load %arg2[%c0_26, %c8] : memref<4x64xf32, #tpu.memory_space<vmem>>, vector<4x8xf32>
    tpu.vector_store %arg2[%c0_26, %c8], %109 {strides = array<i32>} : memref<4x64xf32, #tpu.memory_space<vmem>>, vector<4x8xf32>,
    %cst_27 = arith.constant 3.000000e+00 : f32
    %111 = vector.broadcast %cst_27 : f32 to vector<4x8xf32>
    %112 = arith.mulf %0, %111 : vector<4x8xf32>
    %113 = arith.subf %112, %84 : vector<4x8xf32>
    %cst_28 = arith.constant dense<0xFF800000> : vector<4xf32>
    %114 = vector.multi_reduction <maximumf>, %113, %cst_28 [1] : vector<4x8xf32> to vector<4xf32>
    %115 = vector.shape_cast %114 : vector<4xf32> to vector<4x1xf32>
    %116 = vector.broadcast %115 : vector<4x1xf32> to vector<4x8xf32>
    %117 = arith.subf %113, %116 : vector<4x8xf32>
    %118 = math.exp %117 : vector<4x8xf32>
    %cst_29 = arith.constant dense<0.000000e+00> : vector<4xf32>
    %119 = vector.multi_reduction <add>, %118, %cst_29 [1] : vector<4x8xf32> to vector<4xf32>
    %120 = vector.shape_cast %119 : vector<4xf32> to vector<4x1xf32>
    %121 = vector.broadcast %120 : vector<4x1xf32> to vector<4x8xf32>
    %122 = arith.divf %118, %121 : vector<4x8xf32>
    %c0_30 = arith.constant 0 : index
    %c16 = arith.constant 16 : index
    %123 = vector.load %arg2[%c0_30, %c16] : memref<4x64xf32, #tpu.memory_space<vmem>>, vector<4x8xf32>
    tpu.vector_store %arg2[%c0_30, %c16], %122 {strides = array<i32>} : memref<4x64xf32, #tpu.memory_space<vmem>>, vector<4x8xf32>,
    %cst_31 = arith.constant 1.000000e+00 : f32
    %124 = vector.broadcast %cst_31 : f32 to vector<4x8xf32>
    %125 = arith.mulf %0, %124 : vector<4x8xf32>
    %126 = arith.subf %125, %84 : vector<4x8xf32>
    %cst_32 = arith.constant dense<0xFF800000> : vector<4xf32>
    %127 = vector.multi_reduction <maximumf>, %126, %cst_32 [1] : vector<4x8xf32> to vector<4xf32>
    %128 = vector.shape_cast %127 : vector<4xf32> to vector<4x1xf32>
    %129 = vector.broadcast %128 : vector<4x1xf32> to vector<4x8xf32>
    %130 = arith.subf %126, %129 : vector<4x8xf32>
    %131 = math.exp %130 : vector<4x8xf32>
    %cst_33 = arith.constant dense<0.000000e+00> : vector<4xf32>
    %132 = vector.multi_reduction <add>, %131, %cst_33 [1] : vector<4x8xf32> to vector<4xf32>
    %133 = vector.shape_cast %132 : vector<4xf32> to vector<4x1xf32>
    %134 = vector.broadcast %133 : vector<4x1xf32> to vector<4x8xf32>
    %135 = arith.divf %131, %134 : vector<4x8xf32>
    %c0_34 = arith.constant 0 : index
    %c24 = arith.constant 24 : index
    %136 = vector.load %arg2[%c0_34, %c24] : memref<4x64xf32, #tpu.memory_space<vmem>>, vector<4x8xf32>
    tpu.vector_store %arg2[%c0_34, %c24], %135 {strides = array<i32>} : memref<4x64xf32, #tpu.memory_space<vmem>>, vector<4x8xf32>,
    %cst_35 = arith.constant -1.000000e+00 : f32
    %137 = vector.broadcast %cst_35 : f32 to vector<4x8xf32>
    %138 = arith.mulf %0, %137 : vector<4x8xf32>
    %139 = arith.subf %138, %84 : vector<4x8xf32>
    %cst_36 = arith.constant dense<0xFF800000> : vector<4xf32>
    %140 = vector.multi_reduction <maximumf>, %139, %cst_36 [1] : vector<4x8xf32> to vector<4xf32>
    %141 = vector.shape_cast %140 : vector<4xf32> to vector<4x1xf32>
    %142 = vector.broadcast %141 : vector<4x1xf32> to vector<4x8xf32>
    %143 = arith.subf %139, %142 : vector<4x8xf32>
    %144 = math.exp %143 : vector<4x8xf32>
    %cst_37 = arith.constant dense<0.000000e+00> : vector<4xf32>
    %145 = vector.multi_reduction <add>, %144, %cst_37 [1] : vector<4x8xf32> to vector<4xf32>
    %146 = vector.shape_cast %145 : vector<4xf32> to vector<4x1xf32>
    %147 = vector.broadcast %146 : vector<4x1xf32> to vector<4x8xf32>
    %148 = arith.divf %144, %147 : vector<4x8xf32>
    %c0_38 = arith.constant 0 : index
    %c32 = arith.constant 32 : index
    %149 = vector.load %arg2[%c0_38, %c32] : memref<4x64xf32, #tpu.memory_space<vmem>>, vector<4x8xf32>
    tpu.vector_store %arg2[%c0_38, %c32], %148 {strides = array<i32>} : memref<4x64xf32, #tpu.memory_space<vmem>>, vector<4x8xf32>,
    %cst_39 = arith.constant -3.000000e+00 : f32
    %150 = vector.broadcast %cst_39 : f32 to vector<4x8xf32>
    %151 = arith.mulf %0, %150 : vector<4x8xf32>
    %152 = arith.subf %151, %84 : vector<4x8xf32>
    %cst_40 = arith.constant dense<0xFF800000> : vector<4xf32>
    %153 = vector.multi_reduction <maximumf>, %152, %cst_40 [1] : vector<4x8xf32> to vector<4xf32>
    %154 = vector.shape_cast %153 : vector<4xf32> to vector<4x1xf32>
    %155 = vector.broadcast %154 : vector<4x1xf32> to vector<4x8xf32>
    %156 = arith.subf %152, %155 : vector<4x8xf32>
    %157 = math.exp %156 : vector<4x8xf32>
    %cst_41 = arith.constant dense<0.000000e+00> : vector<4xf32>
    %158 = vector.multi_reduction <add>, %157, %cst_41 [1] : vector<4x8xf32> to vector<4xf32>
    %159 = vector.shape_cast %158 : vector<4xf32> to vector<4x1xf32>
    %160 = vector.broadcast %159 : vector<4x1xf32> to vector<4x8xf32>
    %161 = arith.divf %157, %160 : vector<4x8xf32>
    %c0_42 = arith.constant 0 : index
    %c40 = arith.constant 40 : index
    %162 = vector.load %arg2[%c0_42, %c40] : memref<4x64xf32, #tpu.memory_space<vmem>>, vector<4x8xf32>
    tpu.vector_store %arg2[%c0_42, %c40], %161 {strides = array<i32>} : memref<4x64xf32, #tpu.memory_space<vmem>>, vector<4x8xf32>,
    %cst_43 = arith.constant -5.000000e+00 : f32
    %163 = vector.broadcast %cst_43 : f32 to vector<4x8xf32>
    %164 = arith.mulf %0, %163 : vector<4x8xf32>
    %165 = arith.subf %164, %84 : vector<4x8xf32>
    %cst_44 = arith.constant dense<0xFF800000> : vector<4xf32>
    %166 = vector.multi_reduction <maximumf>, %165, %cst_44 [1] : vector<4x8xf32> to vector<4xf32>
    %167 = vector.shape_cast %166 : vector<4xf32> to vector<4x1xf32>
    %168 = vector.broadcast %167 : vector<4x1xf32> to vector<4x8xf32>
    %169 = arith.subf %165, %168 : vector<4x8xf32>
    %170 = math.exp %169 : vector<4x8xf32>
    %cst_45 = arith.constant dense<0.000000e+00> : vector<4xf32>
    %171 = vector.multi_reduction <add>, %170, %cst_45 [1] : vector<4x8xf32> to vector<4xf32>
    %172 = vector.shape_cast %171 : vector<4xf32> to vector<4x1xf32>
    %173 = vector.broadcast %172 : vector<4x1xf32> to vector<4x8xf32>
    %174 = arith.divf %170, %173 : vector<4x8xf32>
    %c0_46 = arith.constant 0 : index
    %c48 = arith.constant 48 : index
    %175 = vector.load %arg2[%c0_46, %c48] : memref<4x64xf32, #tpu.memory_space<vmem>>, vector<4x8xf32>
    tpu.vector_store %arg2[%c0_46, %c48], %174 {strides = array<i32>} : memref<4x64xf32, #tpu.memory_space<vmem>>, vector<4x8xf32>,
    %cst_47 = arith.constant -7.000000e+00 : f32
    %176 = vector.broadcast %cst_47 : f32 to vector<4x8xf32>
    %177 = arith.mulf %0, %176 : vector<4x8xf32>
    %178 = arith.subf %177, %84 : vector<4x8xf32>
    %cst_48 = arith.constant dense<0xFF800000> : vector<4xf32>
    %179 = vector.multi_reduction <maximumf>, %178, %cst_48 [1] : vector<4x8xf32> to vector<4xf32>
    %180 = vector.shape_cast %179 : vector<4xf32> to vector<4x1xf32>
    %181 = vector.broadcast %180 : vector<4x1xf32> to vector<4x8xf32>
    %182 = arith.subf %178, %181 : vector<4x8xf32>
    %183 = math.exp %182 : vector<4x8xf32>
    %cst_49 = arith.constant dense<0.000000e+00> : vector<4xf32>
    %184 = vector.multi_reduction <add>, %183, %cst_49 [1] : vector<4x8xf32> to vector<4xf32>
    %185 = vector.shape_cast %184 : vector<4xf32> to vector<4x1xf32>
    %186 = vector.broadcast %185 : vector<4x1xf32> to vector<4x8xf32>
    %187 = arith.divf %183, %186 : vector<4x8xf32>
    %c0_50 = arith.constant 0 : index
    %c56 = arith.constant 56 : index
    %188 = vector.load %arg2[%c0_50, %c56] : memref<4x64xf32, #tpu.memory_space<vmem>>, vector<4x8xf32>
    tpu.vector_store %arg2[%c0_50, %c56], %187 {strides = array<i32>} : memref<4x64xf32, #tpu.memory_space<vmem>>, vector<4x8xf32>,
    return
  }
  func.func @transform_0(%arg0: i32) -> (i32, i32) {
    %c0_i32 = arith.constant 0 : i32
    %c0_i32_0 = arith.constant 0 : i32
    return %arg0, %c0_i32 : i32, i32
  }
  func.func @transform_1(%arg0: i32) -> (i32, i32) {
    %c0_i32 = arith.constant 0 : i32
    %c0_i32_0 = arith.constant 0 : i32
    return %arg0, %c0_i32 : i32, i32
  }
}

</mosaic_0001>

<bundles_post_ra>
// kernel: tpu_custom_call.1
= control target key start
LH: loop header
LB: loop body
LE: loop exit
PB: predicated region body
PF: predicated region fallthrough
CT: control target
= control target key end

     0   :  { %6 = vsyncpa [#allocation3], 0  ;;  %s411_s0 = inlined_call_operand.hbm [shape: f32[4,8], index: 0, kind: input, shape index: {}]   ;;  %s412_s1 = inlined_call_operand.hbm [shape: f32[4,64], index: 1, kind: output, shape index: {}]  }
   0x1   :  { %7 = vsyncpa [#allocation4], 0  ;;  %s335_s6 = smov [#allocation2]  }
   0x2   :  { %s14_s7 = sshll.u32 %s335_s6, 4  ;;  %s15_s7 = int_to_ptr.vmem [resolvable:$true] %s14_s7 }
   0x3   :  { %s299_s8 = scalar_lea.vmem %s15_s7, 64  ;;  %p304_p1 = scmp.lt.s32.totalorder %s15_s7, %s15_s7 }
   0x4   :  { %p300_p0 = scmp.ne.s32.totalorder %s15_s7, %s299_s8  ;;  %p305_p2 = scmp.lt.s32.totalorder %s299_s8, %s299_s8 }
   0x6   :  { %p306_p3 = por %p305_p2, %p304_p1 }
   0x8   :  { %p307_p4 = pnand %p306_p3, %p300_p0 }
   0xa   :  { %310 = shalt.err (!%p307_p4)
}
   0xb   :  { %17 = dma.hbm_to_vmem [thread:$0]  %s411_s0, 64, %s15_s7, [#allocation3]  }
   0xc   :  { %331 = dma.done.wait [#allocation3], 64  }
   0xd   :  { %332 = vsyncadd [#allocation3], 4294967232  ;;  %v22_v0 = vlaneseq  ;;  %vm26_vm4 = vcmask 60416   ;;  %v357_v2 = vld [vmem:[#allocation2] sm:$0xf]  ;;  %s336_s0 = smov 8  }
   0xe   :  { %v122_v49 = vmul.f32 3.0, %v357_v2  ;;  %v103_v50 = vmul.f32 5.0, %v357_v2  ;;  %v159_v52 = vmul.f32 -1.0, %v357_v2  ;;  %v197_v55 = vmul.f32 -5.0, %v357_v2  ;;  %s337_s11 = smov 16   ;;  %s338_s12 = smov 24  }
   0xf   :  { %v23_v1 = vand.u32 127, %v22_v0  ;;  %v178_v56 = vmul.f32 -3.0, %v357_v2  ;;  %v216_v61 = vmul.f32 -7.0, %v357_v2  ;;  %v89_v62 = vmul.f32 7.0, %v357_v2  ;;  %s339_s13 = smov 32   ;;  %s340_s14 = smov 40  }
  0x10   :  { %s341_s15 = smov 48   ;;  %s342_s16 = smov 56   ;;  %vm120_vm9 = vcmask 126016   ;;  %vm139_vm10 = vcmask 191616   ;;  %vm157_vm11 = vcmask 257216   ;;  %vm176_vm12 = vcmask 322816  }
  0x11   :  { %vm24_vm0 = vcmp.eq.s32.totalorder %v23_v1, 0  ;;  %vm41_vm1 = vcmp.eq.s32.totalorder %v23_v1, 2  ;;  %vm33_vm2 = vcmp.eq.s32.totalorder %v23_v1, 1  ;;  %vm49_vm3 = vcmp.eq.s32.totalorder %v23_v1, 3  ;;  %s343_s17 = smov [#allocation5]  }
  0x12   :  { %v25_v3 = vsel %vm24_vm0, %v357_v2, 0.0  ;;  %v42_v4 = vsel %vm41_vm1, %v357_v2, 0.0  ;;  %v34_v5 = vsel %vm33_vm2, %v357_v2, 0.0  ;;  %v50_v6 = vsel %vm49_vm3, %v357_v2, 0.0  ;;  %s241_s18 = sshll.u32 %s343_s17, 4  ;;  %s242_s18 = int_to_ptr.vmem [resolvable:$true] %s241_s18 }
  0x13   :  { %v27_v7 = vsel %vm26_vm4, %v25_v3, 0.0  ;;  %v43_v8 = vsel %vm26_vm4, %v42_v4, 0.0  ;;  %vm57_vm5 = vcmp.eq.s32.totalorder %v23_v1, 4  ;;  %vm65_vm6 = vcmp.eq.s32.totalorder %v23_v1, 5  ;;  %s311_s19 = scalar_lea.vmem %s242_s18, 64  ;;  %p316_p6 = scmp.lt.s32.totalorder %s242_s18, %s242_s18 }
  0x14   :  { %28 = vadd.xlane.f32.xlu0 %v27_v7  ;;  %44 = vadd.xlane.f32.xlu1 %v43_v8  ;;  %v35_v9 = vsel %vm26_vm4, %v34_v5, 0.0  ;;  %v51_v10 = vsel %vm26_vm4, %v50_v6, 0.0  ;;  %v58_v11 = vsel %vm57_vm5, %v357_v2, 0.0  ;;  %v66_v12 = vsel %vm65_vm6, %v357_v2, 0.0  ;;  %p312_p5 = scmp.ne.s32.totalorder %s242_s18, %s311_s19  ;;  %p317_p7 = scmp.lt.s32.totalorder %s311_s19, %s311_s19 }
  0x15   :  { %vm73_vm7 = vcmp.eq.s32.totalorder %v23_v1, 6  ;;  %vm81_vm8 = vcmp.eq.s32.totalorder %v23_v1, 7  ;;  %v59_v13 = vsel %vm26_vm4, %v58_v11, 0.0  ;;  %v67_v14 = vsel %vm26_vm4, %v66_v12, 0.0 }
  0x16   :  { %v74_v15 = vsel %vm73_vm7, %v357_v2, 0.0  ;;  %v82_v16 = vsel %vm81_vm8, %v357_v2, 0.0  ;;  %vm195_vm13 = vcmask 388416   ;;  %vm214_vm14 = vcmask 454016   ;;  %p318_p8 = por %p317_p7, %p316_p6 }
  0x17   :  { %v75_v17 = vsel %vm26_vm4, %v74_v15, 0.0  ;;  %v83_v18 = vsel %vm26_vm4, %v82_v16, 0.0  ;;  %vm233_vm15 = vcmask 519616  }
  0x18   :  { %36 = vadd.xlane.f32.xlu0 %v35_v9  ;;  %52 = vadd.xlane.f32.xlu1 %v51_v10  ;;  %p319_p9 = pnand %p318_p8, %p312_p5 }
  0x1c   :  { %60 = vadd.xlane.f32.xlu0 %v59_v13  ;;  %68 = vadd.xlane.f32.xlu1 %v67_v14 }
  0x20   :  { %76 = vadd.xlane.f32.xlu0 %v75_v17  ;;  %84 = vadd.xlane.f32.xlu1 %v83_v18 }
  0x9d   :  { %v29_v19 = vpop.xlane.xlu0 %28  ;;  %v45_v20 = vpop.xlane.xlu1 %44 }
  0x9e   :  { %v30_v21 = vsub.f32 %v357_v2, %v29_v19  ;;  %v46_v22 = vsub.f32 %v357_v2, %v45_v20 }
  0xa0   :  { %v31_v27 = vand.u32 2147483647, %v30_v21  ;;  %v47_v29 = vand.u32 2147483647, %v46_v22 }
  0xa1   :  { %v37_v23 = vpop.xlane.xlu0 %36  ;;  %v53_v24 = vpop.xlane.xlu1 %52 }
  0xa2   :  { %v38_v25 = vsub.f32 %v357_v2, %v37_v23  ;;  %v54_v26 = vsub.f32 %v357_v2, %v53_v24 }
  0xa4   :  { %v39_v28 = vand.u32 2147483647, %v38_v25  ;;  %v55_v33 = vand.u32 2147483647, %v54_v26 }
  0xa5   :  { %v61_v30 = vpop.xlane.xlu0 %60  ;;  %v69_v31 = vpop.xlane.xlu1 %68 }
  0xa6   :  { %v40_v32 = vadd.f32 %v39_v28, %v31_v27  ;;  %v62_v34 = vsub.f32 %v357_v2, %v61_v30  ;;  %v70_v35 = vsub.f32 %v357_v2, %v69_v31 }
  0xa8   :  { %v48_v36 = vadd.f32 %v47_v29, %v40_v32  ;;  %v63_v37 = vand.u32 2147483647, %v62_v34  ;;  %v71_v41 = vand.u32 2147483647, %v70_v35 }
  0xa9   :  { %v77_v38 = vpop.xlane.xlu0 %76  ;;  %v85_v39 = vpop.xlane.xlu1 %84 }
  0xaa   :  { %v56_v40 = vadd.f32 %v55_v33, %v48_v36  ;;  %v78_v42 = vsub.f32 %v357_v2, %v77_v38  ;;  %v86_v43 = vsub.f32 %v357_v2, %v85_v39 }
  0xac   :  { %v64_v44 = vadd.f32 %v63_v37, %v56_v40  ;;  %v79_v45 = vand.u32 2147483647, %v78_v42  ;;  %v87_v47 = vand.u32 2147483647, %v86_v43 }
  0xae   :  { %v72_v46 = vadd.f32 %v71_v41, %v64_v44 }
  0xb0   :  { %v80_v48 = vadd.f32 %v79_v45, %v72_v46 }
  0xb2   :  { %v88_v51 = vadd.f32 %v87_v47, %v80_v48 }
  0xb4   :  { %v123_v53 = vsub.f32 %v122_v49, %v88_v51  ;;  %v104_v54 = vsub.f32 %v103_v50, %v88_v51  ;;  %v160_v59 = vsub.f32 %v159_v52, %v88_v51  ;;  %v141_v60 = vsub.f32 %v357_v2, %v88_v51 }
  0xb5   :  { %v198_v1 = vsub.f32 %v197_v55, %v88_v51  ;;  %v179_v3 = vsub.f32 %v178_v56, %v88_v51  ;;  %v217_v6 = vsub.f32 %v216_v61, %v88_v51  ;;  %v90_v7 = vsub.f32 %v89_v62, %v88_v51 }
  0xb6   :  { %v124_v57 = vsel %vm26_vm4, %v123_v53, -inf  ;;  %v105_v58 = vsel %vm26_vm4, %v104_v54, -inf  ;;  %v161_v63 = vsel %vm26_vm4, %v160_v59, -inf  ;;  %v142_v0 = vsel %vm26_vm4, %v141_v60, -inf }
  0xb7   :  { %125 = vmax.xlane.f32.xlu1 %v124_v57  ;;  %106 = vmax.xlane.f32.xlu0 %v105_v58  ;;  %v199_v4 = vsel %vm26_vm4, %v198_v1, -inf  ;;  %v180_v5 = vsel %vm26_vm4, %v179_v3, -inf  ;;  %v218_v8 = vsel %vm26_vm4, %v217_v6, -inf  ;;  %v91_v2 = vsel %vm26_vm4, %v90_v7, -inf }
  0xbb   :  { %162 = vmax.xlane.f32.xlu1 %v161_v63  ;;  %143 = vmax.xlane.f32.xlu0 %v142_v0 }
  0xbf   :  { %200 = vmax.xlane.f32.xlu1 %v199_v4  ;;  %181 = vmax.xlane.f32.xlu0 %v180_v5 }
  0xc3   :  { %219 = vmax.xlane.f32.xlu0 %v218_v8  ;;  %92 = vmax.xlane.f32.xlu1 %v91_v2 }
 0x140   :  { %v126_v9 = vpop.xlane.xlu1 %125  ;;  %v107_v10 = vpop.xlane.xlu0 %106 }
 0x141   :  { %v127_v11 = vsub.f32 %v123_v53, %v126_v9  ;;  %v108_v12 = vsub.f32 %v104_v54, %v107_v10 }
 0x143   :  { %v109_v13 = vmul.f32 1.442695, %v108_v12  ;;  %v128_v14 = vmul.f32 1.442695, %v127_v11 }
 0x144   :  { %v163_v15 = vpop.xlane.xlu1 %162  ;;  %v144_v16 = vpop.xlane.xlu0 %143 }
 0x145   :  { %v145_v17 = vsub.f32 %v141_v60, %v144_v16  ;;  %259 = vpow2.f32 %v109_v13  ;;  %v164_v18 = vsub.f32 %v160_v59, %v163_v15 }
 0x146   :  { %261 = vpow2.f32 %v128_v14 }
 0x147   :  { %v146_v19 = vmul.f32 1.442695, %v145_v17  ;;  %v165_v22 = vmul.f32 1.442695, %v164_v18 }
 0x148   :  { %v201_v20 = vpop.xlane.xlu1 %200  ;;  %v182_v21 = vpop.xlane.xlu0 %181 }
 0x149   :  { %263 = vpow2.f32 %v146_v19  ;;  %v183_v23 = vsub.f32 %v179_v3, %v182_v21  ;;  %v202_v27 = vsub.f32 %v198_v1, %v201_v20 }
 0x14a   :  { %265 = vpow2.f32 %v165_v22 }
 0x14b   :  { %v184_v28 = vmul.f32 1.442695, %v183_v23  ;;  %v203_v31 = vmul.f32 1.442695, %v202_v27 }
 0x14c   :  { %v93_v24 = vpop.xlane.xlu1 %92  ;;  %v220_v29 = vpop.xlane.xlu0 %219 }
 0x14d   :  { %v94_v25 = vsub.f32 %v90_v7, %v93_v24  ;;  %v221_v32 = vsub.f32 %v217_v6, %v220_v29 }
 0x14f   :  { %v95_v26 = vmul.f32 1.442695, %v94_v25  ;;  %v222_v35 = vmul.f32 1.442695, %v221_v32 }
 0x151   :  { %267 = vpow2.f32 %v95_v26 }
 0x152   :  { %v260_v30 = vpop.eup %259  ;;  %269 = vpow2.f32 %v184_v28 }
 0x153   :  { %v111_v33 = vsel %vm26_vm4, %v260_v30, 0.0  ;;  %v262_v34 = vpop.eup %261  ;;  %271 = vpow2.f32 %v203_v31 }
 0x154   :  { %112 = vadd.xlane.f32.xlu1 %v111_v33  ;;  %v130_v36 = vsel %vm26_vm4, %v262_v34, 0.0  ;;  %273 = vpow2.f32 %v222_v35 }
 0x156   :  { %v264_v37 = vpop.eup %263 }
 0x157   :  { %v148_v38 = vsel %vm26_vm4, %v264_v37, 0.0  ;;  %v266_v39 = vpop.eup %265 }
 0x158   :  { %131 = vadd.xlane.f32.xlu1 %v130_v36  ;;  %v167_v41 = vsel %vm26_vm4, %v266_v39, 0.0 }
 0x15c   :  { %149 = vadd.xlane.f32.xlu1 %v148_v38 }
 0x15e   :  { %v268_v40 = vpop.eup %267 }
 0x15f   :  { %v97_v42 = vsel %vm26_vm4, %v268_v40, 0.0  ;;  %v270_v43 = vpop.eup %269 }
 0x160   :  { %168 = vadd.xlane.f32.xlu1 %v167_v41  ;;  %98 = vadd.xlane.f32.xlu0 %v97_v42  ;;  %v186_v44 = vsel %vm26_vm4, %v270_v43, 0.0  ;;  %v272_v45 = vpop.eup %271 }
 0x161   :  { %v205_v46 = vsel %vm26_vm4, %v272_v45, 0.0  ;;  %v274_v47 = vpop.eup %273 }
 0x162   :  { %v224_v48 = vsel %vm26_vm4, %v274_v47, 0.0 }
 0x164   :  { %187 = vadd.xlane.f32.xlu1 %v186_v44 }
 0x168   :  { %206 = vadd.xlane.f32.xlu1 %v205_v46 }
 0x16c   :  { %225 = vadd.xlane.f32.xlu1 %v224_v48 }
 0x1dd   :  { %v113_v49 = vpop.xlane.xlu1 %112 }
 0x1de   :  { %275 = vrcp.f32 %v113_v49 }
 0x1e1   :  { %v132_v50 = vpop.xlane.xlu1 %131 }
 0x1e2   :  { %277 = vrcp.f32 %v132_v50 }
 0x1e5   :  { %v150_v51 = vpop.xlane.xlu1 %149 }
 0x1e6   :  { %279 = vrcp.f32 %v150_v51 }
 0x1e9   :  { %v99_v52 = vpop.xlane.xlu0 %98  ;;  %v169_v53 = vpop.xlane.xlu1 %168 }
 0x1ea   :  { %281 = vrcp.f32 %v99_v52 }
 0x1eb   :  { %v276_v54 = vpop.eup %275  ;;  %283 = vrcp.f32 %v169_v53 }
 0x1ec   :  { %v115_v55 = vmul.f32 %v276_v54, %v260_v30 }
 0x1ed   :  { %v188_v56 = vpop.xlane.xlu1 %187 }
 0x1ee   :  { %285 = vrcp.f32 %v188_v56  ;;  %117 = vrot.lane.b32.xlu0 %v115_v55, %s336_s0 }
 0x1ef   :  { %v278_v57 = vpop.eup %277 }
 0x1f0   :  { %v134_v58 = vmul.f32 %v278_v57, %v262_v34 }
 0x1f1   :  { %v207_v59 = vpop.xlane.xlu1 %206 }
 0x1f2   :  { %287 = vrcp.f32 %v207_v59  ;;  %136 = vrot.lane.b32.xlu0 %v134_v58, %s337_s11 }
 0x1f3   :  { %v280_v60 = vpop.eup %279 }
 0x1f4   :  { %v152_v61 = vmul.f32 %v280_v60, %v264_v37 }
 0x1f5   :  { %v226_v62 = vpop.xlane.xlu1 %225 }
 0x1f6   :  { %289 = vrcp.f32 %v226_v62  ;;  %154 = vrot.lane.b32.xlu1 %v152_v61, %s338_s12 }
 0x1f7   :  { %v282_v63 = vpop.eup %281 }
 0x1f8   :  { %v284_v0 = vpop.eup %283  ;;  %v101_v1 = vmul.f32 %v282_v63, %v268_v40 }
 0x1f9   :  { %v171_v3 = vmul.f32 %v284_v0, %v266_v39 }
 0x1fa   :  { %102 = vst.msk [vmem:[#allocation5] sm:$0xf] %vm26_vm4, %v101_v1 }
 0x1fb   :  { %v286_v4 = vpop.eup %285  ;;  %173 = vrot.lane.b32.xlu0 %v171_v3, %s339_s13 }
 0x1fc   :  { %v190_v5 = vmul.f32 %v286_v4, %v270_v43 }
 0x1ff   :  { %v288_v6 = vpop.eup %287  ;;  %192 = vrot.lane.b32.xlu0 %v190_v5, %s340_s14 }
 0x200   :  { %v209_v7 = vmul.f32 %v288_v6, %v272_v45 }
 0x203   :  { %v290_v8 = vpop.eup %289  ;;  %211 = vrot.lane.b32.xlu0 %v209_v7, %s341_s15 }
 0x204   :  { %v228_v2 = vmul.f32 %v290_v8, %v274_v47 }
 0x207   :  { %230 = vrot.lane.b32.xlu0 %v228_v2, %s342_s16 }
 0x260   :  { %v118_v9 = vpop.permute.xlu0 %117 }
 0x261   :  { %121 = vst.msk [vmem:[#allocation5] sm:$0xf] %vm120_vm9, %v118_v9 }
 0x264   :  { %v137_v10 = vpop.permute.xlu0 %136 }
 0x265   :  { %140 = vst.msk [vmem:[#allocation5] sm:$0xf] %vm139_vm10, %v137_v10 }
 0x268   :  { %v155_v11 = vpop.permute.xlu1 %154 }
 0x269   :  { %158 = vst.msk [vmem:[#allocation5] sm:$0xf] %vm157_vm11, %v155_v11 }
 0x26d   :  { %v174_v12 = vpop.permute.xlu0 %173 }
 0x26e   :  { %177 = vst.msk [vmem:[#allocation5] sm:$0xf] %vm176_vm12, %v174_v12 }
 0x271   :  { %v193_v13 = vpop.permute.xlu0 %192 }
 0x272   :  { %196 = vst.msk [vmem:[#allocation5] sm:$0xf] %vm195_vm13, %v193_v13 }
 0x275   :  { %v212_v14 = vpop.permute.xlu0 %211 }
 0x276   :  { %215 = vst.msk [vmem:[#allocation5] sm:$0xf] %vm214_vm14, %v212_v14 }
 0x279   :  { %v231_v15 = vpop.permute.xlu0 %230 }
 0x27a   :  { %234 = vst.msk [vmem:[#allocation5] sm:$0xf] %vm233_vm15, %v231_v15 }
 0x27b   :  { %322 = shalt.err (!%p319_p9)
}
 0x27c   :  { %244 = dma.vmem_to_hbm [thread:$0]  %s242_s18, 64, %s412_s1, [#allocation4]  }
 0x27d   :  { %333 = dma.done.wait [#allocation4], 64  }
 0x27e   :  { %334 = vsyncadd [#allocation4], 4294967232 }
 0x27f   :  { %248 = vsyncpa [#allocation3], 1 }
 0x280   :  { %249 = vsyncpa [#allocation4], 1 }

</bundles_post_ra>
